<compile_context>
chip_gen: v7x
topology: tpu7x:2x2x1
jax: 0.10.0
libtpu: 0.0.40
codegen_flags: <defaults>
</compile_context>

<pallas_src>
import math

import jax
import jax.numpy as jnp
from jax.experimental import pallas as pl
from jax.experimental.pallas import tpu as pltpu


# ----------------------------------------------------------------------------
# Kernel: per (channel, row-slab) block, clamp -> *255 -> round -> uint8
# ----------------------------------------------------------------------------
def _tensor2image_kernel(x_ref, o_ref):
    x = x_ref[...].astype(jnp.float32)       # (1, TH, W)
    x = jnp.clip(x, 0.0, 1.0)                # clamp_(0, 1); min_max=(0,1) is a no-op normalize
    x = jnp.round(x * 255.0)                 # numpy .round() == round-half-to-even
    # f32 -> i32 is exact (integral values in [0, 255]); i32 -> u8 truncates.
    o_ref[...] = x.astype(jnp.int32).astype(jnp.uint8)


# ----------------------------------------------------------------------------
# Tiling policy
# ----------------------------------------------------------------------------
_FULL_BLOCK_THRESHOLD = 1 << 20   # <= 1 MiB f32 per channel: one full block
_MIN_TOTAL_STEPS = 8              # megacore (2-TC) load-balance target on v7x


def _default_budget_bytes() -> int:
    """Per-block f32 input budget, by chip generation (HBM-bound sweet spots)."""
    try:
        kind = jax.devices()[0].device_kind.lower()
    except Exception:
        kind = ""
    if "v7" in kind or "7x" in kind:
        return 8 << 20
    if "v6" in kind:
        return 4 << 20
    if "v5" in kind:
        return 2 << 20
    return 4 << 20


def _pick_row_tile(h: int, w: int, c: int, budget_bytes: int,
                   min_total_steps: int = _MIN_TOTAL_STEPS) -> int:
    """Row-slab height TH for blocks of shape (1, TH, w).

    TH is a multiple of 32 (uint8 sublane packing) unless it spans the full H
    extent.  The grid uses pl.cdiv(h, TH), so TH need not divide h: Pallas
    masks the ragged tail block."""
    if h <= 32 or h * w * 4 <= _FULL_BLOCK_THRESHOLD:
        return h
    # Largest 32-multiple row count whose f32 block fits the budget.
    rows_budget = max(32, ((budget_bytes // (w * 4)) // 32) * 32)
    # Enough row blocks that C * row_blocks >= min_total_steps (v7x megacore).
    min_row_blocks = max(1, math.ceil(min_total_steps / max(c, 1)))
    rows_balance = max(32, math.ceil(math.ceil(h / min_row_blocks) / 32) * 32)
    th = min(rows_budget, rows_balance)
    return h if th >= h else th


# ----------------------------------------------------------------------------
# Pallas-backed CHW float -> CHW uint8 (with optional channel reversal)
# ----------------------------------------------------------------------------
def pallas_chw_to_uint8(x: jax.Array, flip_channels: bool, *,
                        budget_bytes: int | None = None,
                        row_tile: int | None = None) -> jax.Array:
    """x: (C, H, W) float -> uint8 (C, H, W).  Channel order is reversed when
    flip_channels (RGB->BGR) -- folded into the output index_map for free."""
    C, H, W = x.shape
    if budget_bytes is None:
        budget_bytes = _default_budget_bytes()

    # Lane-density guard: a last dim that isn't a multiple of 128 forces masked
    # partial stores.  If the flattened spatial extent is 128-aligned, tile a
    # (C, H*W/128, 128) view instead (reshape is free: same memory order).
    flat = (W % 128 != 0) and ((H * W) % 128 == 0)
    if flat:
        h_k, w_k = (H * W) // 128, 128
        x_k = x.reshape(C, h_k, w_k)
    else:
        h_k, w_k = H, W
        x_k = x

    th = row_tile if row_tile is not None else _pick_row_tile(h_k, w_k, C, budget_bytes)
    grid = (C, pl.cdiv(h_k, th))

    if flip_channels:
        out_map = lambda c, h: (C - 1 - c, h, 0)
    else:
        out_map = lambda c, h: (c, h, 0)

    # VMEM: double-buffered f32 input + uint8 output blocks, plus slack.
    # Cap well below v7x's 64 MiB physical VMEM.
    blk_bytes = th * w_k * (4 + 1)
    vmem_limit = int(min(48 << 20, max(16 << 20, 2 * blk_bytes + (4 << 20))))

    out = pl.pallas_call(
        _tensor2image_kernel,
        out_shape=jax.ShapeDtypeStruct((C, h_k, w_k), jnp.uint8),
        grid_spec=pltpu.PrefetchScalarGridSpec(
            num_scalar_prefetch=0,
            grid=grid,
            in_specs=[pl.BlockSpec((1, th, w_k), lambda c, h: (c, h, 0))],
            out_specs=pl.BlockSpec((1, th, w_k), out_map),
        ),
        compiler_params=pltpu.CompilerParams(
            dimension_semantics=("parallel", "parallel"),
            vmem_limit_bytes=vmem_limit,
        ),
    )(x_k)

    if flat:
        out = out.reshape(C, H, W)
    return out


# ----------------------------------------------------------------------------
# JAX analogue of image_utils.tensor2img(list, rgb2bgr, uint8, (0, 1))
# ----------------------------------------------------------------------------
def tensor2img(tensors, rgb2bgr: bool = True):
    result = []
    for t in tensors:
        x = t
        if x.ndim == 4:
            if x.shape[0] != 1:
                # TODO(synk): batched (N>1) path uses torchvision.make_grid
                # compositing in the reference; only single-image implemented.
                raise NotImplementedError("batched (N>1) tensor2img not implemented")
            x = x[0]
        if x.ndim == 2:
            x = x[None]                                   # gray -> (1, H, W)
        C, H, W = x.shape
        chw_u8 = pallas_chw_to_uint8(x, flip_channels=(rgb2bgr and C == 3))
        # TODO(synk): the CHW->HWC reorder is a second (uint8) memory pass; a
        # fully fused minor-dim-3 interleave store lowers poorly on Mosaic, so
        # the reorder stays in the XLA wrapper for correctness/robustness.
        img = jnp.transpose(chw_u8, (1, 2, 0))            # CHW -> HWC
        if C == 1:
            img = img[..., 0]                             # gray image -> (H, W)
        result.append(img)
    return result


class Tensor2Image:
    """Pallas-backed analogue of lada.lib.transforms.Tensor2Image."""

    def __init__(self, rgb2bgr, squeeze):
        self.rgb2bgr = rgb2bgr
        self.squeeze = squeeze

    def __call__(self, tensor):
        if not self.squeeze:
            # Reference forward() discards the converted image and returns the
            # *input* tensor when squeeze=False; skip the wasted conversion.
            return tensor
        img = tensor2img([tensor], rgb2bgr=self.rgb2bgr)[0]
        return jnp.squeeze(img)


if __name__ == "__main__":
    key = jax.random.PRNGKey(0)
    key1, key2 = jax.random.split(key)

    def ref_convert_chw_to_hwc(chw, rgb2bgr):
        r = jnp.clip(chw.astype(jnp.float32), 0.0, 1.0)
        r = jnp.transpose(r, (1, 2, 0))
        if rgb2bgr and chw.shape[0] == 3:
            r = r[..., ::-1]
        return jnp.round(r * 255.0).astype(jnp.uint8)

    # --- Test 1: forward path, (N=1, C=3, H=16, W=16), values outside [0, 1]
    # so the clamp is exercised.  W=16 is not 128-aligned -> flattened path.
    x = jax.random.uniform(key1, (1, 3, 16, 16), dtype=jnp.float32,
                           minval=-0.25, maxval=1.25)
    mod = Tensor2Image(rgb2bgr=True, squeeze=True)
    out = jax.block_until_ready(mod(x))
    assert out.shape == (16, 16, 3), out.shape
    assert out.dtype == jnp.uint8, out.dtype
    assert bool(jnp.array_equal(out, ref_convert_chw_to_hwc(x[0], True))), \
        "Pallas output mismatches reference (test 1)"

    # --- Test 2: ragged row-tile path (row_tile=32 does not divide H=40),
    # 128-aligned W, channel flip via output index_map.
    x2 = jax.random.uniform(key2, (3, 40, 256), dtype=jnp.float32,
                            minval=-0.5, maxval=1.5)
    out2 = jax.block_until_ready(
        pallas_chw_to_uint8(x2, flip_channels=True, row_tile=32))
    ref2 = jnp.round(jnp.clip(x2, 0.0, 1.0) * 255.0).astype(jnp.uint8)[::-1]
    assert out2.shape == (3, 40, 256) and out2.dtype == jnp.uint8
    assert bool(jnp.array_equal(out2, ref2)), \
        "Pallas output mismatches reference (test 2, ragged tail)"

    # --- Test 3: squeeze=False returns the input tensor unchanged (reference
    # behavior), and no kernel runs at all.
    passthrough = Tensor2Image(rgb2bgr=True, squeeze=False)(x)
    assert passthrough is x

    print("KERNEL_OK")
</pallas_src>

<mosaic_0001>
module attributes {stable_mosaic.version = 11 : i64} {
  func.func @_tensor2image_kernel(%arg0: i32, %arg1: i32, %arg2: memref<1x2x128xf32, #tpu.memory_space<vmem>>, %arg3: memref<1x2x128xi8, #tpu.memory_space<vmem>>) attributes {dimension_semantics = [#tpu.dimension_semantics<parallel>, #tpu.dimension_semantics<parallel>], iteration_bounds = array<i64: 3, 1>, scalar_prefetch = 0 : i64, scratch_operands = 0 : i64, tpu.core_type = #tpu.core_type<tc>, window_params = [{transform_indices = @transform_0, window_bounds = array<i64: 1, 2, 128>}, {transform_indices = @transform_1, window_bounds = array<i64: 1, 2, 128>}]} {
    %c0 = arith.constant 0 : index
    %c0_0 = arith.constant 0 : index
    %c0_1 = arith.constant 0 : index
    %0 = vector.load %arg2[%c0, %c0_0, %c0_1] : memref<1x2x128xf32, #tpu.memory_space<vmem>>, vector<1x2x128xf32>
    %cst = arith.constant 0.000000e+00 : f32
    %cst_2 = arith.constant 1.000000e+00 : f32
    %1 = vector.broadcast %cst : f32 to vector<1x2x128xf32>
    %2 = arith.maximumf %1, %0 : vector<1x2x128xf32>
    %3 = vector.broadcast %cst_2 : f32 to vector<1x2x128xf32>
    %4 = arith.minimumf %3, %2 : vector<1x2x128xf32>
    %cst_3 = arith.constant 2.550000e+02 : f32
    %5 = vector.broadcast %cst_3 : f32 to vector<1x2x128xf32>
    %6 = arith.mulf %4, %5 : vector<1x2x128xf32>
    %7 = math.roundeven %6 : vector<1x2x128xf32>
    %8 = arith.fptosi %7 : vector<1x2x128xf32> to vector<1x2x128xi32>
    %9 = arith.trunci %8 : vector<1x2x128xi32> to vector<1x2x128xi8>
    %c0_4 = arith.constant 0 : index
    %c0_5 = arith.constant 0 : index
    %c0_6 = arith.constant 0 : index
    %10 = vector.load %arg3[%c0_4, %c0_5, %c0_6] : memref<1x2x128xi8, #tpu.memory_space<vmem>>, vector<1x2x128xi8>
    tpu.vector_store %arg3[%c0_4, %c0_5, %c0_6], %9 {strides = array<i32>} : memref<1x2x128xi8, #tpu.memory_space<vmem>>, vector<1x2x128xi8>,
    return
  }
  func.func @transform_0(%arg0: i32, %arg1: i32) -> (i32, i32, i32) {
    %c0_i32 = arith.constant 0 : i32
    %c0_i32_0 = arith.constant 0 : i32
    return %arg0, %arg1, %c0_i32 : i32, i32, i32
  }
  func.func @transform_1(%arg0: i32, %arg1: i32) -> (i32, i32, i32) {
    %c2_i32 = arith.constant 2 : i32
    %0 = arith.subi %c2_i32, %arg0 : i32
    %c0_i32 = arith.constant 0 : i32
    %c0_i32_0 = arith.constant 0 : i32
    return %0, %arg1, %c0_i32 : i32, i32, i32
  }
}

</mosaic_0001>

<bundles_post_ra>
// kernel: tpu_custom_call.1
= control target key start
LH: loop header
LB: loop body
LE: loop exit
PB: predicated region body
PF: predicated region fallthrough
CT: control target
= control target key end

     0   :  { %6 = vsyncpa [#allocation3], 0  ;;  %s537_s0 = inlined_call_operand.hbm [shape: f32[3,2,128], index: 0, kind: input, shape index: {}]   ;;  %s538_s1 = inlined_call_operand.vmem [shape: u8[3,2,128], index: 1, kind: output, shape index: {}]  }
   0x1   :  { %8 = vsyncpa [#allocation3 + $0x1], 0  ;;  %s413_s6 = smov 0   ;;  %s415_s7 = smov 0  }
   0x2   :  { %s417_s8 = smov 0   ;;  %s419_s9 = smov 0  }
   0x3   :  { %s421_s10 = smov 0   ;;  %s423_s11 = smov 0  }
   0x4 LB: > { %s252_s12 = sadd.s32 4294967295, %s400_s11   ;;  %s26_s13 = sadd.s32 1, %s396_s10  ;;  %s400_s11 = sphi %s423_s11, %s14_s11   ;;  %s396_s10 = sphi %s421_s10, %s548_s10   ;;  %s392_s9 = sphi %s419_s9, %s547_s9   ;;  %s388_s8 = sphi %s417_s8, %s546_s8   ;;  %s384_s7 = sphi %s415_s7, %s545_s7   ;;  %s380_s6 = sphi %s413_s6, %s544_s6  }
   0x5   : > { %p28_p0 = scmp.ge.s32.totalorder %s26_s13, 3  ;;  %s35_s14 = sadd.s32 1, %s388_s8 }
   0x6   : > { %p42_p1 = scmp.ne.s32.totalorder %s388_s8, %s384_s7  ;;  %p43_p2 = scmp.eq.s32.totalorder %s400_s11, 0 }
   0x7   : > { %s550_s13 = smov (%p28_p0, %s26_s13), 0  ;;  %p48_p4 = scmp.ne.s32.totalorder %s384_s7, %s380_s6 }
   0x8   : > { %p449_p3 = por %p43_p2, %p42_p1  ;;  %s30_s16 = ssub.s32 %s396_s10, %s550_s13 }
   0x9   : > { %p49_p5 = scmp.eq.s32.totalorder %s252_s12, 0  ;;  %p33_p6 = scmp.eq.s32.totalorder %s30_s16, 0 }
   0xa   : > { %p271_p8 = scmp.lt.s32.totalorder %s400_s11, 3  ;;  %s102_s19 = sand.u32 1, %s388_s8  }
   0xb   : > { %p456_p7 = por %p49_p5, %p48_p4  ;;  %s257_s20 = sshll.u32 %s396_s10, 5 }
   0xc   : > { %s462_s18 = scalar_select %p33_p6, %s388_s8, %s35_s14  }
   0xd   : > { %s256_s21 = sshll.u32 %s102_s19, 1  ;;  %s469_s24 = scalar_lea.hbm %s537_s0, %s257_s20 }
   0xe   : > { %s106_s25 = scalar_lea.vmem [#allocation2], %s256_s21  ;;  %p473_p9 = pnand %p271_p8, %p449_p3 }
   0xf   : > { %s114_s26 = sshll.u32 %s106_s25, 4  ;;  %s103_s28 = scalar_lea.sflag [#allocation3], %s102_s19  ;;  %s477_s26 = int_to_ptr.vmem [resolvable:$true] %s114_s26 }
  0x10   : > { %s320_s29 = scalar_lea.hbm %s469_s24, 32  ;;  %p322_p13 = pneg %p473_p9 }
  0x11   : > { %p321_p12 = scmp.ne.s32.totalorder %s469_s24, %s320_s29  ;;  %s325_s3 = scalar_lea.hbm %s537_s0, 96 }
  0x12   : > { %p326_p2 = scmp.lt.u32.totalorder %s469_s24, %s537_s0  ;;  %p327_p3 = scmp.lt.u32.totalorder %s325_s3, %s320_s29 }
  0x13   : > { %p323_p0 = pnand %p322_p13, %p321_p12  ;;  %p329_p5 = scmp.lt.u32.totalorder %s320_s29, %s469_s24 }
  0x14   : > { %p328_p4 = por %p327_p3, %p326_p2 }
  0x15   : > { %p324_p1 = pneg %p323_p0 }
  0x16   : > { %p330_p6 = por %p329_p5, %p328_p4 }
  0x18   : > { %p331_p8 = pnand %p330_p6, %p324_p1 }
  0x1a   : > { %334 = shalt.err (!%p331_p8)
}
  0x1b   : > { %s335_s6 = scalar_lea.vmem %s477_s26, 32  ;;  %s402_s12 = smov [#allocation2]  }
  0x1c   : > { %p336_p12 = scmp.ne.s32.totalorder %s477_s26, %s335_s6  ;;  %s340_s14 = sshll.u32 %s402_s12, 4  ;;  %s341_s14 = int_to_ptr.vmem [resolvable:$false] %s340_s14 }
  0x1d   : > { %s342_s15 = scalar_lea.vmem %s341_s14, 64  ;;  %p343_p11 = scmp.lt.s32.totalorder %s477_s26, %s341_s14 }
  0x1e   : > { %p338_p0 = pnand %p336_p12, %p322_p13  ;;  %p344_p2 = scmp.lt.s32.totalorder %s342_s15, %s335_s6 }
  0x20   : > { %p339_p10 = pneg %p338_p0  ;;  %p345_p3 = por %p344_p2, %p343_p11 }
  0x22   : > { %p346_p4 = pnand %p345_p3, %p339_p10 }
  0x24   : > { %349 = shalt.err (!%p346_p4)
}
  0x25   : > { %270 = dma.hbm_to_vmem [thread:$0]  (!%p473_p9), %s469_s24, 32, %s477_s26, %s103_s28  }
  0x26   : > { %p542_p1 = scmp.lt.s32.totalorder %s400_s11, 4  ;;  %p543_p5 = scmp.ge.s32.totalorder %s400_s11, 1 }
  0x28   : > { %p120_p13 = pnand %p543_p5, %p542_p1 }
  0x29   : > { %s125_s16 = sand.u32 (!%p120_p13), 1, %s384_s7  }
  0x2a   : > { %123 = sbr.rel (%p120_p13) target bundleno = 65 (0x41), region = 24  ;;  %s259_s19 = sshll.u32 (!%p120_p13), %s125_s16, 1 }
  0x2b   : > { %s126_s20 = scalar_lea.sflag (!%p120_p13), [#allocation3], %s125_s16  ;;  %s129_s21 = scalar_lea.vmem (!%p120_p13), [#allocation2], %s259_s19 }
  0x31   : > { %375 = dma.done.wait (%p456_p7), %s126_s20, 32  }
  0x32   : > { %377 = vsyncadd (%p456_p7), %s126_s20, 4294967264  ;;  %s150_s22 = ssub.s32 2, %s392_s9  ;;  %v158_v0 = vld [vmem:[%s129_s21] sm:$0x3]  ;;  %vm165_vm0 = vcmask 1040384  }
  0x33   : > { %p151_p10 = scmp.lt.s32.totalorder %s150_s22, 2  ;;  %v159_v1 = vmax.f32 %v158_v0, 0.0  ;;  %vm166_vm1 = vsmask.f32 256 }
  0x34   : > { %vm167_vm2 = vmand %vm165_vm0, %vm166_vm1 }
  0x35   : > { %s552_s22 = smov (!%p151_p10, %s150_s22), 2  ;;  %v160_v2 = vmin.f32 %v159_v1, 1.0 }
  0x36   : > { %s156_s25 = scalar_lea.vmem %s538_s1, %s552_s22 }
  0x37   : > { %v161_v3 = vmul.f32 255.0, %v160_v2  ;;  %v168_v6 = vld [vmem:[%s156_s25] sm:$0x1] }
  0x39   : > { %v264_v4 = vcvt.f32.s32 %v161_v3 }
  0x3b   : > { %v163_v5 = vpack.c.b16 %v264_v4, %v264_v4 }
  0x3d   : > { %v164_v7 = vpack.c.b8 %v163_v5, %v163_v5 }
  0x3f   : > { %v169_v8 = vsel %vm167_vm2, %v164_v7, %v168_v6 }
  0x40   : > { %170 = vst [vmem:[%s156_s25] sm:$0x1] %v169_v8 }
  0x41 PF: > { %s14_s11 = sadd.s32 1, %s400_s11   ;;  %s544_s6 = smov %s384_s7 }
  0x42   : > { %p11_p7 = scmp.ge.s32.totalorder %s14_s11, 5   ;;  %s545_s7 = smov %s388_s8 }
  0x43   : > { %s546_s8 = smov %s462_s18  ;;  %s547_s9 = smov %s396_s10 }
  0x44   : > { %s548_s10 = smov %s550_s13  ;;  %13 = sbr.rel (!%p11_p7) target bundleno = 4 (0x4), region = 64 }
  0x4b   :  { %197 = vsyncpa [#allocation3], 1 }
  0x4c   :  { %199 = vsyncpa [#allocation3 + $0x1], 1 }

</bundles_post_ra>
